<compile_context>
chip_gen: v5e
topology: v5e:2x2
jax: 0.10.0
libtpu: 0.0.40
codegen_flags: <defaults>
</compile_context>

<pallas_src>
from functools import partial

import jax
import jax.numpy as jnp
import numpy as np
from jax.experimental import pallas as pl
from jax.experimental.pallas import tpu as pltpu

LN_EPS = 1e-5        # PyTorch nn.LayerNorm default eps
MASK_VALUE = -1e30   # finite "-inf": safe with the online-softmax recurrence


def _layernorm(x, gamma, beta):
    """fp32 LayerNorm over the last axis (biased variance, eps inside rsqrt)."""
    mean = jnp.mean(x, axis=-1, keepdims=True)
    var = jnp.mean((x - mean) ** 2, axis=-1, keepdims=True)
    return (x - mean) * jax.lax.rsqrt(var + LN_EPS) * gamma + beta


def attention_kernel(xq_ref, xkv_ref, ln_ref, qkln_ref, wqkv_ref, wo_ref, bo_ref,
                     o_ref,
                     xnq_sc, q_sc, m_sc, l_sc, acc_sc, out_sc,
                     *, causal, mxu_dtype):
    qi = pl.program_id(1)      # query-tile index
    h = pl.program_id(2)       # head index
    ki = pl.program_id(3)      # kv-tile index
    nh = pl.num_programs(2)
    nk = pl.num_programs(3)
    tq = xq_ref.shape[1]
    tk = xkv_ref.shape[1]

    gamma = ln_ref[0:1, :]     # (1, dim) -- 2D slices keep TPU layouts simple
    beta = ln_ref[1:2, :]      # (1, dim)

    # ---- once per (batch, q-tile): pre-norm of the query x tile + zero the
    #      output-projection accumulator (reused across heads & kv tiles).
    @pl.when((h == 0) & (ki == 0))
    def _init_q_tile():
        xnq_sc[...] = _layernorm(xq_ref[0], gamma, beta)
        out_sc[...] = jnp.zeros(out_sc.shape, jnp.float32)

    # ---- once per (batch, q-tile, head): q projection + q_norm, and init of
    #      the online-softmax state.  q_norm gamma/beta were pre-multiplied by
    #      `scale` in the wrapper, so no (tq, tk) scaling is needed later.
    @pl.when(ki == 0)
    def _init_head():
        qh = jnp.dot(xnq_sc[...].astype(mxu_dtype),
                     wqkv_ref[0, 0].astype(mxu_dtype),
                     preferred_element_type=jnp.float32)            # (tq, dh)
        q_sc[...] = _layernorm(qh, qkln_ref[0:1, :], qkln_ref[1:2, :])
        m_sc[...] = jnp.full(m_sc.shape, -jnp.inf, jnp.float32)
        l_sc[...] = jnp.zeros(l_sc.shape, jnp.float32)
        acc_sc[...] = jnp.zeros(acc_sc.shape, jnp.float32)

    # ---- every step: k/v projection for this kv tile + online-softmax update.
    def _process_kv_tile():
        xnk = _layernorm(xkv_ref[0], gamma, beta)                    # (tk, dim)
        xnk_c = xnk.astype(mxu_dtype)
        kh = jnp.dot(xnk_c, wqkv_ref[0, 1].astype(mxu_dtype),
                     preferred_element_type=jnp.float32)             # (tk, dh)
        kh = _layernorm(kh, qkln_ref[2:3, :], qkln_ref[3:4, :])
        vh = jnp.dot(xnk_c, wqkv_ref[0, 2].astype(mxu_dtype),
                     preferred_element_type=jnp.float32)             # (tk, dh)

        # scores (tq, tk): contract the dim_head axes directly (no transpose).
        s = jax.lax.dot_general(q_sc[...].astype(mxu_dtype), kh.astype(mxu_dtype),
                                (((1,), (1,)), ((), ())),
                                preferred_element_type=jnp.float32)
        if causal:
            q_pos = qi * tq + jax.lax.broadcasted_iota(jnp.int32, (tq, tk), 0)
            k_pos = ki * tk + jax.lax.broadcasted_iota(jnp.int32, (tq, tk), 1)
            s = jnp.where(k_pos > q_pos, MASK_VALUE, s)

        m_prev = m_sc[...]
        m_new = jnp.maximum(m_prev, jnp.max(s, axis=-1, keepdims=True))
        alpha = jnp.exp(m_prev - m_new)
        p = jnp.exp(s - m_new)
        l_sc[...] = alpha * l_sc[...] + jnp.sum(p, axis=-1, keepdims=True)
        acc_sc[...] = alpha * acc_sc[...] + jnp.dot(
            p.astype(mxu_dtype), vh.astype(mxu_dtype),
            preferred_element_type=jnp.float32)
        m_sc[...] = m_new

    if causal:
        # Skip kv tiles that lie entirely above the diagonal.
        @pl.when(ki * tk <= qi * tq + (tq - 1))
        def _():
            _process_kv_tile()
    else:
        _process_kv_tile()

    # ---- finalize this head at the last kv tile: normalize and accumulate
    #      head_out @ Wo[h] into the shared output accumulator (no concat).
    @pl.when(ki == nk - 1)
    def _finalize_head():
        l = l_sc[...]
        r = pl.reciprocal(l, approx=True)        # EUP
        r = r * (2.0 - l * r)                    # one Newton step -> fp32 accuracy
        head_out = acc_sc[...] * r               # (tq, dh)
        out_sc[...] += jnp.dot(head_out.astype(mxu_dtype),
                               wo_ref[0].astype(mxu_dtype),
                               preferred_element_type=jnp.float32)

    # ---- write the output tile once, after the last head / last kv tile.
    @pl.when((h == nh - 1) & (ki == nk - 1))
    def _write_out():
        o_ref[0] = (out_sc[...] + bo_ref[...]).astype(o_ref.dtype)


def attention_forward(x, params, *, heads, dim_head, causal=False, attn_mult=1,
                      mxu_dtype=jnp.float32, block_q=128, block_k=128):
    """Fused ViT attention forward. x: (b, n, dim). Returns (b, n, dim)."""
    (g, bta, wq, wk, wv, qg, qb, kg, kb, wo, bo) = params
    b, n, dim = x.shape
    scale = attn_mult * 8.0 / dim_head

    # Sequence tiles: 128-wide when n divides evenly, otherwise the full
    # (small) sequence in one tile.  (8, 128)-friendly either way.
    tq = block_q if n % block_q == 0 else n
    tk = block_k if n % block_k == 0 else n
    nq, nkv = n // tq, n // tk

    # --- wrapper-side packing (cheap XLA ops, done once) -------------------
    ln = jnp.stack([g.reshape(dim), bta.reshape(dim)], axis=0)        # (2, dim)
    # Fold `scale` into q_norm's affine params: (s*gamma, s*beta) -> free.
    qkln = jnp.stack([qg.reshape(dim_head) * scale,
                      qb.reshape(dim_head) * scale,
                      kg.reshape(dim_head),
                      kb.reshape(dim_head)], axis=0)                  # (4, dh)

    def per_head(w):  # (dim, heads*dh) -> (heads, dim, dh)
        return w.reshape(dim, heads, dim_head).transpose(1, 0, 2)

    wqkv = jnp.stack([per_head(wq), per_head(wk), per_head(wv)], axis=1)
    # wqkv: (heads, 3, dim, dh) -- one packed, head-indexed weight stream.
    wo_h = wo.reshape(heads, dim_head, dim)                           # (heads, dh, dim)
    bo2 = bo.reshape(1, dim)

    kernel = partial(attention_kernel, causal=causal, mxu_dtype=mxu_dtype)

    grid = (b, nq, heads, nkv)
    in_specs = [
        pl.BlockSpec((1, tq, dim), lambda bb, qi, hh, ki: (bb, qi, 0)),             # x (q tile)
        pl.BlockSpec((1, tk, dim), lambda bb, qi, hh, ki: (bb, ki, 0)),             # x (kv tile)
        pl.BlockSpec((2, dim), lambda bb, qi, hh, ki: (0, 0)),                      # pre-norm params
        pl.BlockSpec((4, dim_head), lambda bb, qi, hh, ki: (0, 0)),                 # q/k norm params
        pl.BlockSpec((1, 3, dim, dim_head), lambda bb, qi, hh, ki: (hh, 0, 0, 0)),  # Wq/Wk/Wv[h]
        pl.BlockSpec((1, dim_head, dim), lambda bb, qi, hh, ki: (hh, 0, 0)),        # Wo[h]
        pl.BlockSpec((1, dim), lambda bb, qi, hh, ki: (0, 0)),                      # out bias
    ]
    out_spec = pl.BlockSpec((1, tq, dim), lambda bb, qi, hh, ki: (bb, qi, 0))
    scratch = [
        pltpu.VMEM((tq, dim), jnp.float32),        # layernormed query x tile
        pltpu.VMEM((tq, dim_head), jnp.float32),   # q (normed + scaled), current head
        pltpu.VMEM((tq, 1), jnp.float32),          # online-softmax running max
        pltpu.VMEM((tq, 1), jnp.float32),          # online-softmax running denom
        pltpu.VMEM((tq, dim_head), jnp.float32),   # attn @ v accumulator, current head
        pltpu.VMEM((tq, dim), jnp.float32),        # output-projection accumulator
    ]
    # TODO(synk): invariant weight inputs are still double-buffered by the
    # default pipeline; a single-buffered pipeline_mode could reclaim one copy.
    return pl.pallas_call(
        kernel,
        out_shape=jax.ShapeDtypeStruct((b, n, dim), x.dtype),
        grid=grid,
        in_specs=in_specs,
        out_specs=out_spec,
        scratch_shapes=scratch,
        compiler_params=pltpu.CompilerParams(
            dimension_semantics=("parallel", "parallel", "arbitrary", "arbitrary")),
    )(x, x, ln, qkln, wqkv, wo_h, bo2)


def attention_ref(x, params, *, heads, dim_head, causal=False, attn_mult=1):
    """Pure-JAX reference matching the PyTorch forward."""
    (g, bta, wq, wk, wv, qg, qb, kg, kb, wo, bo) = params
    b, n, dim = x.shape
    scale = attn_mult * 8.0 / dim_head

    xn = _layernorm(x, g[0], bta[0])
    q = xn @ wq
    k = xn @ wk
    v = xn @ wv
    # 'b n (h d) -> b h n d'
    q = q.reshape(b, n, heads, dim_head).transpose(0, 2, 1, 3)
    k = k.reshape(b, n, heads, dim_head).transpose(0, 2, 1, 3)
    v = v.reshape(b, n, heads, dim_head).transpose(0, 2, 1, 3)
    q = _layernorm(q, qg[0], qb[0])
    k = _layernorm(k, kg[0], kb[0])
    dots = jnp.einsum('bhqd,bhkd->bhqk', q, k) * scale
    if causal:
        mask = jnp.triu(jnp.ones((n, n), bool), 1)
        dots = jnp.where(mask, -jnp.inf, dots)
    attn = jax.nn.softmax(dots, axis=-1)
    out = jnp.einsum('bhqk,bhkd->bhqd', attn, v)
    out = out.transpose(0, 2, 1, 3).reshape(b, n, heads * dim_head)
    return out @ wo + bo[0]


if __name__ == "__main__":
    # Small shapes consistent with the module.
    B, N, DIM = 2, 8, 32
    HEADS, DIM_HEAD = 2, 16
    INNER = HEADS * DIM_HEAD

    key = jax.random.PRNGKey(0)
    ks = jax.random.split(key, 8)

    x = jax.random.normal(ks[0], (B, N, DIM), jnp.float32)

    # Deterministic synthetic parameters (LayerNorms at PyTorch defaults).
    # TODO(synk): PyTorch zero-inits to_q / to_out via dense_init; random init
    # is used here so the kernel exercises a non-trivial data path.
    params = (
        jnp.ones((1, DIM), jnp.float32),                                  # norm gamma
        jnp.zeros((1, DIM), jnp.float32),                                 # norm beta
        0.02 * jax.random.normal(ks[1], (DIM, INNER), jnp.float32),       # wq
        0.02 * jax.random.normal(ks[2], (DIM, INNER), jnp.float32),       # wk
        0.02 * jax.random.normal(ks[3], (DIM, INNER), jnp.float32),       # wv
        jnp.ones((1, DIM_HEAD), jnp.float32),                             # q_norm gamma
        jnp.zeros((1, DIM_HEAD), jnp.float32),                            # q_norm beta
        jnp.ones((1, DIM_HEAD), jnp.float32),                             # k_norm gamma
        jnp.zeros((1, DIM_HEAD), jnp.float32),                            # k_norm beta
        0.02 * jax.random.normal(ks[4], (INNER, DIM), jnp.float32),       # to_out W
        0.01 * jax.random.normal(ks[5], (1, DIM), jnp.float32),           # to_out b
    )

    # 1) fp32 MXU operands, non-causal (exact path).
    out = attention_forward(x, params, heads=HEADS, dim_head=DIM_HEAD)
    out = jax.block_until_ready(out)
    ref = attention_ref(x, params, heads=HEADS, dim_head=DIM_HEAD)
    np.testing.assert_allclose(np.asarray(out), np.asarray(ref),
                               rtol=2e-3, atol=1e-4)

    # 2) causal path (finite -1e30 mask + diagonal-tile skipping).
    out_c = attention_forward(x, params, heads=HEADS, dim_head=DIM_HEAD,
                              causal=True)
    out_c = jax.block_until_ready(out_c)
    ref_c = attention_ref(x, params, heads=HEADS, dim_head=DIM_HEAD,
                          causal=True)
    np.testing.assert_allclose(np.asarray(out_c), np.asarray(ref_c),
                               rtol=2e-3, atol=1e-4)

    # 3) bf16 MXU operands (v6e/v7x throughput mode); loose tolerance vs fp32.
    out_bf16 = attention_forward(x, params, heads=HEADS, dim_head=DIM_HEAD,
                                 mxu_dtype=jnp.bfloat16)
    out_bf16 = jax.block_until_ready(out_bf16)
    np.testing.assert_allclose(np.asarray(out_bf16), np.asarray(ref),
                               rtol=1e-1, atol=1e-2)

    print("KERNEL_OK")
</pallas_src>

<mosaic_0001>
module attributes {stable_mosaic.version = 11 : i64} {
  func.func @attention_kernel(%arg0: i32, %arg1: i32, %arg2: i32, %arg3: i32, %arg4: memref<1x8x32xf32, #tpu.memory_space<vmem>>, %arg5: memref<1x8x32xf32, #tpu.memory_space<vmem>>, %arg6: memref<2x32xf32, #tpu.memory_space<vmem>>, %arg7: memref<4x16xf32, #tpu.memory_space<vmem>>, %arg8: memref<1x3x32x16xf32, #tpu.memory_space<vmem>>, %arg9: memref<1x16x32xf32, #tpu.memory_space<vmem>>, %arg10: memref<1x32xf32, #tpu.memory_space<vmem>>, %arg11: memref<1x8x32xf32, #tpu.memory_space<vmem>>, %arg12: memref<8x32xf32, #tpu.memory_space<vmem>>, %arg13: memref<8x16xf32, #tpu.memory_space<vmem>>, %arg14: memref<8x1xf32, #tpu.memory_space<vmem>>, %arg15: memref<8x1xf32, #tpu.memory_space<vmem>>, %arg16: memref<8x16xf32, #tpu.memory_space<vmem>>, %arg17: memref<8x32xf32, #tpu.memory_space<vmem>>) attributes {dimension_semantics = [#tpu.dimension_semantics<parallel>, #tpu.dimension_semantics<parallel>, #tpu.dimension_semantics<arbitrary>, #tpu.dimension_semantics<arbitrary>], iteration_bounds = array<i64: 2, 1, 2, 1>, scalar_prefetch = 0 : i64, scratch_operands = 6 : i64, tpu.core_type = #tpu.core_type<tc>, window_params = [{transform_indices = @transform_0, window_bounds = array<i64: 1, 8, 32>}, {transform_indices = @transform_1, window_bounds = array<i64: 1, 8, 32>}, {pipeline_mode = #tpu.pipeline_mode<synchronous>, transform_indices = @transform_2, window_bounds = array<i64: 2, 32>}, {pipeline_mode = #tpu.pipeline_mode<synchronous>, transform_indices = @transform_3, window_bounds = array<i64: 4, 16>}, {transform_indices = @transform_4, window_bounds = array<i64: 1, 3, 32, 16>}, {transform_indices = @transform_5, window_bounds = array<i64: 1, 16, 32>}, {pipeline_mode = #tpu.pipeline_mode<synchronous>, transform_indices = @transform_6, window_bounds = array<i64: 1, 32>}, {transform_indices = @transform_7, window_bounds = array<i64: 1, 8, 32>}]} {
    %c0 = arith.constant 0 : index
    %c0_0 = arith.constant 0 : index
    %0 = vector.load %arg6[%c0, %c0_0] : memref<2x32xf32, #tpu.memory_space<vmem>>, vector<1x32xf32>
    %c1 = arith.constant 1 : index
    %c0_1 = arith.constant 0 : index
    %1 = vector.load %arg6[%c1, %c0_1] : memref<2x32xf32, #tpu.memory_space<vmem>>, vector<1x32xf32>
    %c0_i32 = arith.constant 0 : i32
    %2 = arith.cmpi eq, %arg2, %c0_i32 : i32
    %c0_i32_2 = arith.constant 0 : i32
    %3 = arith.cmpi eq, %arg3, %c0_i32_2 : i32
    %4 = arith.andi %2, %3 : i1
    %5 = arith.extui %4 : i1 to i32
    %c0_i32_3 = arith.constant 0 : i32
    %6 = arith.cmpi ne, %5, %c0_i32_3 : i32
    scf.if %6 {
      %c0_52 = arith.constant 0 : index
      %c0_53 = arith.constant 0 : index
      %c0_54 = arith.constant 0 : index
      %96 = vector.load %arg4[%c0_52, %c0_53, %c0_54] : memref<1x8x32xf32, #tpu.memory_space<vmem>>, vector<1x8x32xf32>
      %97 = vector.shape_cast %96 : vector<1x8x32xf32> to vector<8x32xf32>
      %cst_55 = arith.constant dense<0.000000e+00> : vector<8xf32>
      %98 = vector.multi_reduction <add>, %97, %cst_55 [1] : vector<8x32xf32> to vector<8xf32>
      %99 = vector.shape_cast %98 : vector<8xf32> to vector<8x1xf32>
      %cst_56 = arith.constant 3.200000e+01 : f32
      %100 = vector.broadcast %cst_56 : f32 to vector<8x1xf32>
      %101 = arith.divf %99, %100 : vector<8x1xf32>
      %102 = vector.broadcast %101 : vector<8x1xf32> to vector<8x32xf32>
      %103 = arith.subf %97, %102 : vector<8x32xf32>
      %104 = arith.mulf %103, %103 : vector<8x32xf32>
      %cst_57 = arith.constant dense<0.000000e+00> : vector<8xf32>
      %105 = vector.multi_reduction <add>, %104, %cst_57 [1] : vector<8x32xf32> to vector<8xf32>
      %106 = vector.shape_cast %105 : vector<8xf32> to vector<8x1xf32>
      %cst_58 = arith.constant 3.200000e+01 : f32
      %107 = vector.broadcast %cst_58 : f32 to vector<8x1xf32>
      %108 = arith.divf %106, %107 : vector<8x1xf32>
      %109 = vector.broadcast %101 : vector<8x1xf32> to vector<8x32xf32>
      %110 = arith.subf %97, %109 : vector<8x32xf32>
      %cst_59 = arith.constant 9.99999974E-6 : f32
      %111 = vector.broadcast %cst_59 : f32 to vector<8x1xf32>
      %112 = arith.addf %108, %111 : vector<8x1xf32>
      %113 = math.rsqrt %112 : vector<8x1xf32>
      %114 = vector.broadcast %113 : vector<8x1xf32> to vector<8x32xf32>
      %115 = arith.mulf %110, %114 : vector<8x32xf32>
      %116 = vector.broadcast %0 : vector<1x32xf32> to vector<8x32xf32>
      %117 = arith.mulf %115, %116 : vector<8x32xf32>
      %118 = vector.broadcast %1 : vector<1x32xf32> to vector<8x32xf32>
      %119 = arith.addf %117, %118 : vector<8x32xf32>
      %c0_60 = arith.constant 0 : index
      %c0_61 = arith.constant 0 : index
      %120 = vector.load %arg12[%c0_60, %c0_61] : memref<8x32xf32, #tpu.memory_space<vmem>>, vector<8x32xf32>
      tpu.vector_store %arg12[%c0_60, %c0_61], %119 {strides = array<i32>} : memref<8x32xf32, #tpu.memory_space<vmem>>, vector<8x32xf32>,
      %cst_62 = arith.constant 0.000000e+00 : f32
      %121 = vector.broadcast %cst_62 : f32 to vector<8x32xf32>
      %c0_63 = arith.constant 0 : index
      %c0_64 = arith.constant 0 : index
      %122 = vector.load %arg17[%c0_63, %c0_64] : memref<8x32xf32, #tpu.memory_space<vmem>>, vector<8x32xf32>
      tpu.vector_store %arg17[%c0_63, %c0_64], %121 {strides = array<i32>} : memref<8x32xf32, #tpu.memory_space<vmem>>, vector<8x32xf32>,
    } else {
    }
    %c0_i32_4 = arith.constant 0 : i32
    %7 = arith.cmpi eq, %arg3, %c0_i32_4 : i32
    %8 = arith.extui %7 : i1 to i32
    %c0_i32_5 = arith.constant 0 : i32
    %9 = arith.cmpi ne, %8, %c0_i32_5 : i32
    scf.if %9 {
      %c0_52 = arith.constant 0 : index
      %c0_53 = arith.constant 0 : index
      %96 = vector.load %arg12[%c0_52, %c0_53] : memref<8x32xf32, #tpu.memory_space<vmem>>, vector<8x32xf32>
      %c0_54 = arith.constant 0 : index
      %c0_55 = arith.constant 0 : index
      %c0_56 = arith.constant 0 : index
      %c0_57 = arith.constant 0 : index
      %97 = vector.load %arg8[%c0_54, %c0_55, %c0_56, %c0_57] : memref<1x3x32x16xf32, #tpu.memory_space<vmem>>, vector<1x1x32x16xf32>
      %98 = vector.shape_cast %97 : vector<1x1x32x16xf32> to vector<32x16xf32>
      %cst_58 = arith.constant dense<0.000000e+00> : vector<8x16xf32>
      %99 = tpu.matmul %96, %98, %cst_58 {dimension_numbers = #tpu.dot_dimension_numbers<[1], [0], [0], [1], [0, 0, 1, 1], [], []>} : vector<8x32xf32>, vector<32x16xf32>, vector<8x16xf32> -> vector<8x16xf32>
      %c0_59 = arith.constant 0 : index
      %c0_60 = arith.constant 0 : index
      %100 = vector.load %arg7[%c0_59, %c0_60] : memref<4x16xf32, #tpu.memory_space<vmem>>, vector<1x16xf32>
      %c1_61 = arith.constant 1 : index
      %c0_62 = arith.constant 0 : index
      %101 = vector.load %arg7[%c1_61, %c0_62] : memref<4x16xf32, #tpu.memory_space<vmem>>, vector<1x16xf32>
      %cst_63 = arith.constant dense<0.000000e+00> : vector<8xf32>
      %102 = vector.multi_reduction <add>, %99, %cst_63 [1] : vector<8x16xf32> to vector<8xf32>
      %103 = vector.shape_cast %102 : vector<8xf32> to vector<8x1xf32>
      %cst_64 = arith.constant 1.600000e+01 : f32
      %104 = vector.broadcast %cst_64 : f32 to vector<8x1xf32>
      %105 = arith.divf %103, %104 : vector<8x1xf32>
      %106 = vector.broadcast %105 : vector<8x1xf32> to vector<8x16xf32>
      %107 = arith.subf %99, %106 : vector<8x16xf32>
      %108 = arith.mulf %107, %107 : vector<8x16xf32>
      %cst_65 = arith.constant dense<0.000000e+00> : vector<8xf32>
      %109 = vector.multi_reduction <add>, %108, %cst_65 [1] : vector<8x16xf32> to vector<8xf32>
      %110 = vector.shape_cast %109 : vector<8xf32> to vector<8x1xf32>
      %cst_66 = arith.constant 1.600000e+01 : f32
      %111 = vector.broadcast %cst_66 : f32 to vector<8x1xf32>
      %112 = arith.divf %110, %111 : vector<8x1xf32>
      %113 = vector.broadcast %105 : vector<8x1xf32> to vector<8x16xf32>
      %114 = arith.subf %99, %113 : vector<8x16xf32>
      %cst_67 = arith.constant 9.99999974E-6 : f32
      %115 = vector.broadcast %cst_67 : f32 to vector<8x1xf32>
      %116 = arith.addf %112, %115 : vector<8x1xf32>
      %117 = math.rsqrt %116 : vector<8x1xf32>
      %118 = vector.broadcast %117 : vector<8x1xf32> to vector<8x16xf32>
      %119 = arith.mulf %114, %118 : vector<8x16xf32>
      %120 = vector.broadcast %100 : vector<1x16xf32> to vector<8x16xf32>
      %121 = arith.mulf %119, %120 : vector<8x16xf32>
      %122 = vector.broadcast %101 : vector<1x16xf32> to vector<8x16xf32>
      %123 = arith.addf %121, %122 : vector<8x16xf32>
      %c0_68 = arith.constant 0 : index
      %c0_69 = arith.constant 0 : index
      %124 = vector.load %arg13[%c0_68, %c0_69] : memref<8x16xf32, #tpu.memory_space<vmem>>, vector<8x16xf32>
      tpu.vector_store %arg13[%c0_68, %c0_69], %123 {strides = array<i32>} : memref<8x16xf32, #tpu.memory_space<vmem>>, vector<8x16xf32>,
      %cst_70 = arith.constant 0xFF800000 : f32
      %125 = vector.broadcast %cst_70 : f32 to vector<8x1xf32>
      %c0_71 = arith.constant 0 : index
      %c0_72 = arith.constant 0 : index
      %126 = vector.load %arg14[%c0_71, %c0_72] : memref<8x1xf32, #tpu.memory_space<vmem>>, vector<8x1xf32>
      tpu.vector_store %arg14[%c0_71, %c0_72], %125 {strides = array<i32>} : memref<8x1xf32, #tpu.memory_space<vmem>>, vector<8x1xf32>,
      %cst_73 = arith.constant 0.000000e+00 : f32
      %127 = vector.broadcast %cst_73 : f32 to vector<8x1xf32>
      %c0_74 = arith.constant 0 : index
      %c0_75 = arith.constant 0 : index
      %128 = vector.load %arg15[%c0_74, %c0_75] : memref<8x1xf32, #tpu.memory_space<vmem>>, vector<8x1xf32>
      tpu.vector_store %arg15[%c0_74, %c0_75], %127 {strides = array<i32>} : memref<8x1xf32, #tpu.memory_space<vmem>>, vector<8x1xf32>,
      %cst_76 = arith.constant 0.000000e+00 : f32
      %129 = vector.broadcast %cst_76 : f32 to vector<8x16xf32>
      %c0_77 = arith.constant 0 : index
      %c0_78 = arith.constant 0 : index
      %130 = vector.load %arg16[%c0_77, %c0_78] : memref<8x16xf32, #tpu.memory_space<vmem>>, vector<8x16xf32>
      tpu.vector_store %arg16[%c0_77, %c0_78], %129 {strides = array<i32>} : memref<8x16xf32, #tpu.memory_space<vmem>>, vector<8x16xf32>,
    } else {
    }
    %c0_6 = arith.constant 0 : index
    %c0_7 = arith.constant 0 : index
    %c0_8 = arith.constant 0 : index
    %10 = vector.load %arg5[%c0_6, %c0_7, %c0_8] : memref<1x8x32xf32, #tpu.memory_space<vmem>>, vector<1x8x32xf32>
    %11 = vector.shape_cast %10 : vector<1x8x32xf32> to vector<8x32xf32>
    %cst = arith.constant dense<0.000000e+00> : vector<8xf32>
    %12 = vector.multi_reduction <add>, %11, %cst [1] : vector<8x32xf32> to vector<8xf32>
    %13 = vector.shape_cast %12 : vector<8xf32> to vector<8x1xf32>
    %cst_9 = arith.constant 3.200000e+01 : f32
    %14 = vector.broadcast %cst_9 : f32 to vector<8x1xf32>
    %15 = arith.divf %13, %14 : vector<8x1xf32>
    %16 = vector.broadcast %15 : vector<8x1xf32> to vector<8x32xf32>
    %17 = arith.subf %11, %16 : vector<8x32xf32>
    %18 = arith.mulf %17, %17 : vector<8x32xf32>
    %cst_10 = arith.constant dense<0.000000e+00> : vector<8xf32>
    %19 = vector.multi_reduction <add>, %18, %cst_10 [1] : vector<8x32xf32> to vector<8xf32>
    %20 = vector.shape_cast %19 : vector<8xf32> to vector<8x1xf32>
    %cst_11 = arith.constant 3.200000e+01 : f32
    %21 = vector.broadcast %cst_11 : f32 to vector<8x1xf32>
    %22 = arith.divf %20, %21 : vector<8x1xf32>
    %23 = vector.broadcast %15 : vector<8x1xf32> to vector<8x32xf32>
    %24 = arith.subf %11, %23 : vector<8x32xf32>
    %cst_12 = arith.constant 9.99999974E-6 : f32
    %25 = vector.broadcast %cst_12 : f32 to vector<8x1xf32>
    %26 = arith.addf %22, %25 : vector<8x1xf32>
    %27 = math.rsqrt %26 : vector<8x1xf32>
    %28 = vector.broadcast %27 : vector<8x1xf32> to vector<8x32xf32>
    %29 = arith.mulf %24, %28 : vector<8x32xf32>
    %30 = vector.broadcast %0 : vector<1x32xf32> to vector<8x32xf32>
    %31 = arith.mulf %29, %30 : vector<8x32xf32>
    %32 = vector.broadcast %1 : vector<1x32xf32> to vector<8x32xf32>
    %33 = arith.addf %31, %32 : vector<8x32xf32>
    %c0_13 = arith.constant 0 : index
    %c1_14 = arith.constant 1 : index
    %c0_15 = arith.constant 0 : index
    %c0_16 = arith.constant 0 : index
    %34 = vector.load %arg8[%c0_13, %c1_14, %c0_15, %c0_16] : memref<1x3x32x16xf32, #tpu.memory_space<vmem>>, vector<1x1x32x16xf32>
    %35 = vector.shape_cast %34 : vector<1x1x32x16xf32> to vector<32x16xf32>
    %cst_17 = arith.constant dense<0.000000e+00> : vector<8x16xf32>
    %36 = tpu.matmul %33, %35, %cst_17 {dimension_numbers = #tpu.dot_dimension_numbers<[1], [0], [0], [1], [0, 0, 1, 1], [], []>} : vector<8x32xf32>, vector<32x16xf32>, vector<8x16xf32> -> vector<8x16xf32>
    %c2 = arith.constant 2 : index
    %c0_18 = arith.constant 0 : index
    %37 = vector.load %arg7[%c2, %c0_18] : memref<4x16xf32, #tpu.memory_space<vmem>>, vector<1x16xf32>
    %c3 = arith.constant 3 : index
    %c0_19 = arith.constant 0 : index
    %38 = vector.load %arg7[%c3, %c0_19] : memref<4x16xf32, #tpu.memory_space<vmem>>, vector<1x16xf32>
    %cst_20 = arith.constant dense<0.000000e+00> : vector<8xf32>
    %39 = vector.multi_reduction <add>, %36, %cst_20 [1] : vector<8x16xf32> to vector<8xf32>
    %40 = vector.shape_cast %39 : vector<8xf32> to vector<8x1xf32>
    %cst_21 = arith.constant 1.600000e+01 : f32
    %41 = vector.broadcast %cst_21 : f32 to vector<8x1xf32>
    %42 = arith.divf %40, %41 : vector<8x1xf32>
    %43 = vector.broadcast %42 : vector<8x1xf32> to vector<8x16xf32>
    %44 = arith.subf %36, %43 : vector<8x16xf32>
    %45 = arith.mulf %44, %44 : vector<8x16xf32>
    %cst_22 = arith.constant dense<0.000000e+00> : vector<8xf32>
    %46 = vector.multi_reduction <add>, %45, %cst_22 [1] : vector<8x16xf32> to vector<8xf32>
    %47 = vector.shape_cast %46 : vector<8xf32> to vector<8x1xf32>
    %cst_23 = arith.constant 1.600000e+01 : f32
    %48 = vector.broadcast %cst_23 : f32 to vector<8x1xf32>
    %49 = arith.divf %47, %48 : vector<8x1xf32>
    %50 = vector.broadcast %42 : vector<8x1xf32> to vector<8x16xf32>
    %51 = arith.subf %36, %50 : vector<8x16xf32>
    %cst_24 = arith.constant 9.99999974E-6 : f32
    %52 = vector.broadcast %cst_24 : f32 to vector<8x1xf32>
    %53 = arith.addf %49, %52 : vector<8x1xf32>
    %54 = math.rsqrt %53 : vector<8x1xf32>
    %55 = vector.broadcast %54 : vector<8x1xf32> to vector<8x16xf32>
    %56 = arith.mulf %51, %55 : vector<8x16xf32>
    %57 = vector.broadcast %37 : vector<1x16xf32> to vector<8x16xf32>
    %58 = arith.mulf %56, %57 : vector<8x16xf32>
    %59 = vector.broadcast %38 : vector<1x16xf32> to vector<8x16xf32>
    %60 = arith.addf %58, %59 : vector<8x16xf32>
    %c0_25 = arith.constant 0 : index
    %c2_26 = arith.constant 2 : index
    %c0_27 = arith.constant 0 : index
    %c0_28 = arith.constant 0 : index
    %61 = vector.load %arg8[%c0_25, %c2_26, %c0_27, %c0_28] : memref<1x3x32x16xf32, #tpu.memory_space<vmem>>, vector<1x1x32x16xf32>
    %62 = vector.shape_cast %61 : vector<1x1x32x16xf32> to vector<32x16xf32>
    %cst_29 = arith.constant dense<0.000000e+00> : vector<8x16xf32>
    %63 = tpu.matmul %33, %62, %cst_29 {dimension_numbers = #tpu.dot_dimension_numbers<[1], [0], [0], [1], [0, 0, 1, 1], [], []>} : vector<8x32xf32>, vector<32x16xf32>, vector<8x16xf32> -> vector<8x16xf32>
    %c0_30 = arith.constant 0 : index
    %c0_31 = arith.constant 0 : index
    %64 = vector.load %arg13[%c0_30, %c0_31] : memref<8x16xf32, #tpu.memory_space<vmem>>, vector<8x16xf32>
    %cst_32 = arith.constant dense<0.000000e+00> : vector<8x8xf32>
    %65 = tpu.matmul %64, %60, %cst_32 {dimension_numbers = #tpu.dot_dimension_numbers<[1], [1], [0], [0], [0, 0, 1, 0], [], []>} : vector<8x16xf32>, vector<8x16xf32>, vector<8x8xf32> -> vector<8x8xf32>
    %c0_33 = arith.constant 0 : index
    %c0_34 = arith.constant 0 : index
    %66 = vector.load %arg14[%c0_33, %c0_34] : memref<8x1xf32, #tpu.memory_space<vmem>>, vector<8x1xf32>
    %cst_35 = arith.constant dense<0xFF800000> : vector<8xf32>
    %67 = vector.multi_reduction <maximumf>, %65, %cst_35 [1] : vector<8x8xf32> to vector<8xf32>
    %68 = vector.shape_cast %67 : vector<8xf32> to vector<8x1xf32>
    %69 = arith.maximumf %66, %68 : vector<8x1xf32>
    %70 = arith.subf %66, %69 : vector<8x1xf32>
    %71 = math.exp %70 : vector<8x1xf32>
    %72 = vector.broadcast %69 : vector<8x1xf32> to vector<8x8xf32>
    %73 = arith.subf %65, %72 : vector<8x8xf32>
    %74 = math.exp %73 : vector<8x8xf32>
    %c0_36 = arith.constant 0 : index
    %c0_37 = arith.constant 0 : index
    %75 = vector.load %arg15[%c0_36, %c0_37] : memref<8x1xf32, #tpu.memory_space<vmem>>, vector<8x1xf32>
    %76 = arith.mulf %71, %75 : vector<8x1xf32>
    %cst_38 = arith.constant dense<0.000000e+00> : vector<8xf32>
    %77 = vector.multi_reduction <add>, %74, %cst_38 [1] : vector<8x8xf32> to vector<8xf32>
    %78 = vector.shape_cast %77 : vector<8xf32> to vector<8x1xf32>
    %79 = arith.addf %76, %78 : vector<8x1xf32>
    %c0_39 = arith.constant 0 : index
    %c0_40 = arith.constant 0 : index
    %80 = vector.load %arg15[%c0_39, %c0_40] : memref<8x1xf32, #tpu.memory_space<vmem>>, vector<8x1xf32>
    tpu.vector_store %arg15[%c0_39, %c0_40], %79 {strides = array<i32>} : memref<8x1xf32, #tpu.memory_space<vmem>>, vector<8x1xf32>,
    %c0_41 = arith.constant 0 : index
    %c0_42 = arith.constant 0 : index
    %81 = vector.load %arg16[%c0_41, %c0_42] : memref<8x16xf32, #tpu.memory_space<vmem>>, vector<8x16xf32>
    %82 = vector.broadcast %71 : vector<8x1xf32> to vector<8x16xf32>
    %83 = arith.mulf %82, %81 : vector<8x16xf32>
    %cst_43 = arith.constant dense<0.000000e+00> : vector<8x16xf32>
    %84 = tpu.matmul %74, %63, %cst_43 {dimension_numbers = #tpu.dot_dimension_numbers<[1], [0], [0], [1], [0, 0, 1, 1], [], []>} : vector<8x8xf32>, vector<8x16xf32>, vector<8x16xf32> -> vector<8x16xf32>
    %85 = arith.addf %83, %84 : vector<8x16xf32>
    %c0_44 = arith.constant 0 : index
    %c0_45 = arith.constant 0 : index
    %86 = vector.load %arg16[%c0_44, %c0_45] : memref<8x16xf32, #tpu.memory_space<vmem>>, vector<8x16xf32>
    tpu.vector_store %arg16[%c0_44, %c0_45], %85 {strides = array<i32>} : memref<8x16xf32, #tpu.memory_space<vmem>>, vector<8x16xf32>,
    %c0_46 = arith.constant 0 : index
    %c0_47 = arith.constant 0 : index
    %87 = vector.load %arg14[%c0_46, %c0_47] : memref<8x1xf32, #tpu.memory_space<vmem>>, vector<8x1xf32>
    tpu.vector_store %arg14[%c0_46, %c0_47], %69 {strides = array<i32>} : memref<8x1xf32, #tpu.memory_space<vmem>>, vector<8x1xf32>,
    %c0_i32_48 = arith.constant 0 : i32
    %88 = arith.cmpi eq, %arg3, %c0_i32_48 : i32
    %89 = arith.extui %88 : i1 to i32
    %c0_i32_49 = arith.constant 0 : i32
    %90 = arith.cmpi ne, %89, %c0_i32_49 : i32
    scf.if %90 {
      %c0_52 = arith.constant 0 : index
      %c0_53 = arith.constant 0 : index
      %96 = vector.load %arg15[%c0_52, %c0_53] : memref<8x1xf32, #tpu.memory_space<vmem>>, vector<8x1xf32>
      %97 = tpu.reciprocal %96 {approx = true} : vector<8x1xf32> -> vector<8x1xf32>
      %98 = arith.mulf %96, %97 : vector<8x1xf32>
      %cst_54 = arith.constant 2.000000e+00 : f32
      %99 = vector.broadcast %cst_54 : f32 to vector<8x1xf32>
      %100 = arith.subf %99, %98 : vector<8x1xf32>
      %101 = arith.mulf %97, %100 : vector<8x1xf32>
      %c0_55 = arith.constant 0 : index
      %c0_56 = arith.constant 0 : index
      %102 = vector.load %arg16[%c0_55, %c0_56] : memref<8x16xf32, #tpu.memory_space<vmem>>, vector<8x16xf32>
      %103 = vector.broadcast %101 : vector<8x1xf32> to vector<8x16xf32>
      %104 = arith.mulf %102, %103 : vector<8x16xf32>
      %c0_57 = arith.constant 0 : index
      %c0_58 = arith.constant 0 : index
      %105 = vector.load %arg17[%c0_57, %c0_58] : memref<8x32xf32, #tpu.memory_space<vmem>>, vector<8x32xf32>
      %c0_59 = arith.constant 0 : index
      %c0_60 = arith.constant 0 : index
      %c0_61 = arith.constant 0 : index
      %106 = vector.load %arg9[%c0_59, %c0_60, %c0_61] : memref<1x16x32xf32, #tpu.memory_space<vmem>>, vector<1x16x32xf32>
      %107 = vector.shape_cast %106 : vector<1x16x32xf32> to vector<16x32xf32>
      %cst_62 = arith.constant dense<0.000000e+00> : vector<8x32xf32>
      %108 = tpu.matmul %104, %107, %cst_62 {dimension_numbers = #tpu.dot_dimension_numbers<[1], [0], [0], [1], [0, 0, 1, 1], [], []>} : vector<8x16xf32>, vector<16x32xf32>, vector<8x32xf32> -> vector<8x32xf32>
      %109 = arith.addf %105, %108 : vector<8x32xf32>
      %c0_63 = arith.constant 0 : index
      %c0_64 = arith.constant 0 : index
      %110 = vector.load %arg17[%c0_63, %c0_64] : memref<8x32xf32, #tpu.memory_space<vmem>>, vector<8x32xf32>
      tpu.vector_store %arg17[%c0_63, %c0_64], %109 {strides = array<i32>} : memref<8x32xf32, #tpu.memory_space<vmem>>, vector<8x32xf32>,
    } else {
    }
    %c1_i32 = arith.constant 1 : i32
    %91 = arith.cmpi eq, %arg2, %c1_i32 : i32
    %c0_i32_50 = arith.constant 0 : i32
    %92 = arith.cmpi eq, %arg3, %c0_i32_50 : i32
    %93 = arith.andi %91, %92 : i1
    %94 = arith.extui %93 : i1 to i32
    %c0_i32_51 = arith.constant 0 : i32
    %95 = arith.cmpi ne, %94, %c0_i32_51 : i32
    scf.if %95 {
      %c0_52 = arith.constant 0 : index
      %c0_53 = arith.constant 0 : index
      %96 = vector.load %arg17[%c0_52, %c0_53] : memref<8x32xf32, #tpu.memory_space<vmem>>, vector<8x32xf32>
      %c0_54 = arith.constant 0 : index
      %c0_55 = arith.constant 0 : index
      %97 = vector.load %arg10[%c0_54, %c0_55] : memref<1x32xf32, #tpu.memory_space<vmem>>, vector<1x32xf32>
      %98 = vector.broadcast %97 : vector<1x32xf32> to vector<8x32xf32>
      %99 = arith.addf %96, %98 : vector<8x32xf32>
      %c0_56 = arith.constant 0 : index
      %c0_57 = arith.constant 0 : index
      %c0_58 = arith.constant 0 : index
      %100 = vector.load %arg11[%c0_56, %c0_57, %c0_58] : memref<1x8x32xf32, #tpu.memory_space<vmem>>, vector<1x8x32xf32>
      %101 = vector.shape_cast %100 : vector<1x8x32xf32> to vector<8x32xf32>
      %102 = vector.shape_cast %99 : vector<8x32xf32> to vector<1x8x32xf32>
      tpu.vector_store %arg11[%c0_56, %c0_57, %c0_58], %102 {strides = array<i32>} : memref<1x8x32xf32, #tpu.memory_space<vmem>>, vector<1x8x32xf32>,
    } else {
    }
    return
  }
  func.func @transform_0(%arg0: i32, %arg1: i32, %arg2: i32, %arg3: i32) -> (i32, i32, i32) {
    %c0_i32 = arith.constant 0 : i32
    %c0_i32_0 = arith.constant 0 : i32
    return %arg0, %arg1, %c0_i32 : i32, i32, i32
  }
  func.func @transform_1(%arg0: i32, %arg1: i32, %arg2: i32, %arg3: i32) -> (i32, i32, i32) {
    %c0_i32 = arith.constant 0 : i32
    %c0_i32_0 = arith.constant 0 : i32
    return %arg0, %arg3, %c0_i32 : i32, i32, i32
  }
  func.func @transform_2(%arg0: i32, %arg1: i32, %arg2: i32, %arg3: i32) -> (i32, i32) {
    %c0_i32 = arith.constant 0 : i32
    %c0_i32_0 = arith.constant 0 : i32
    %c0_i32_1 = arith.constant 0 : i32
    return %c0_i32, %c0_i32_0 : i32, i32
  }
  func.func @transform_3(%arg0: i32, %arg1: i32, %arg2: i32, %arg3: i32) -> (i32, i32) {
    %c0_i32 = arith.constant 0 : i32
    %c0_i32_0 = arith.constant 0 : i32
    %c0_i32_1 = arith.constant 0 : i32
    return %c0_i32, %c0_i32_0 : i32, i32
  }
  func.func @transform_4(%arg0: i32, %arg1: i32, %arg2: i32, %arg3: i32) -> (i32, i32, i32, i32) {
    %c0_i32 = arith.constant 0 : i32
    %c0_i32_0 = arith.constant 0 : i32
    %c0_i32_1 = arith.constant 0 : i32
    %c0_i32_2 = arith.constant 0 : i32
    return %arg2, %c0_i32, %c0_i32_0, %c0_i32_1 : i32, i32, i32, i32
  }
  func.func @transform_5(%arg0: i32, %arg1: i32, %arg2: i32, %arg3: i32) -> (i32, i32, i32) {
    %c0_i32 = arith.constant 0 : i32
    %c0_i32_0 = arith.constant 0 : i32
    %c0_i32_1 = arith.constant 0 : i32
    return %arg2, %c0_i32, %c0_i32_0 : i32, i32, i32
  }
  func.func @transform_6(%arg0: i32, %arg1: i32, %arg2: i32, %arg3: i32) -> (i32, i32) {
    %c0_i32 = arith.constant 0 : i32
    %c0_i32_0 = arith.constant 0 : i32
    %c0_i32_1 = arith.constant 0 : i32
    return %c0_i32, %c0_i32_0 : i32, i32
  }
  func.func @transform_7(%arg0: i32, %arg1: i32, %arg2: i32, %arg3: i32) -> (i32, i32, i32) {
    %c0_i32 = arith.constant 0 : i32
    %c0_i32_0 = arith.constant 0 : i32
    return %arg0, %arg1, %c0_i32 : i32, i32, i32
  }
}

</mosaic_0001>

<bundles_post_ra>
// kernel: tpu_custom_call.1
= control target key start
LH: loop header
LB: loop body
LE: loop exit
PB: predicated region body
PF: predicated region fallthrough
CT: control target
= control target key end

     0   :  { %s1403_s0 = inlined_call_operand.vmem [shape: f32[2,8,32], index: 0, kind: input, shape index: {}]   ;;  %s1404_s1 = inlined_call_operand.vmem [shape: f32[2,8,32], index: 1, kind: input, shape index: {}]   ;;  %s1405_s2 = inlined_call_operand.vmem [shape: f32[2,32], index: 2, kind: input, shape index: {}]   ;;  %s1406_s3 = inlined_call_operand.vmem [shape: f32[4,16], index: 3, kind: input, shape index: {}]   ;;  %s1407_s4 = inlined_call_operand.vmem [shape: f32[2,3,32,16], index: 4, kind: input, shape index: {}]   ;;  %s1408_s5 = inlined_call_operand.vmem [shape: f32[2,16,32], index: 5, kind: input, shape index: {}]   ;;  %s1409_s6 = inlined_call_operand.vmem [shape: f32[1,32], index: 6, kind: input, shape index: {}]   ;;  %s1410_s7 = inlined_call_operand.hbm [shape: f32[2,8,32], index: 7, kind: output, shape index: {}]  }
   0x1   :  { %1417 = sst [smem:[#allocation18_spill]] %s1405_s2 }
   0x2   :  { %12 = vsyncpa [#allocation9], 0 }
   0x3   :  { %14 = vsyncpa [#allocation9 + $0x1], 0  ;;  %s1184_s24 = smov 0   ;;  %s1186_s25 = smov 0  }
   0x4   :  { %s1188_s26 = smov 0   ;;  %s1190_s27 = smov 0  }
   0x5   :  { %s1192_s28 = smov 0   ;;  %s1194_s29 = smov 0  }
   0x6   :  { %s1196_s30 = smov 0   ;;  %s1198_s8 = smov 0  }
   0x7 LB: > { %1418 = sst [smem:[#allocation11_spill]] %s1115_s26  ;;  %s899_s9 = sadd.s32 4294967295, %s1135_s8   ;;  %s1135_s8 = sphi %s1198_s8, %s20_s8   ;;  %s1131_s30 = sphi %s1196_s30, %s1435_s30   ;;  %s1127_s29 = sphi %s1194_s29, %s1438_s29   ;;  %s1123_s28 = sphi %s1192_s28, %s1433_s28   ;;  %s1119_s27 = sphi %s1190_s27, %s1432_s27   ;;  %s1115_s26 = sphi %s1188_s26, %s1431_s26   ;;  %s1111_s25 = sphi %s1186_s25, %s1437_s25   ;;  %s1107_s24 = sphi %s1184_s24, %s1436_s24  }
   0x8   : > { %1419 = sst [smem:[#allocation12_spill]] %s1127_s29  ;;  %s900_s10 = sadd.s32 4294967294, %s1135_s8  }
   0x9   : > { %1420 = sst [smem:[#allocation13_spill]] %s1131_s30  ;;  %s38_s11 = sadd.s32 1, %s1127_s29 }
   0xa   : > { %p40_p0 = scmp.ge.s32.totalorder %s38_s11, 2  ;;  %s46_s12 = sadd.s32 1, %s1131_s30 }
   0xb   : > { %p236_p1 = scmp.ne.s32.totalorder %s1115_s26, %s1111_s25  ;;  %p237_p2 = scmp.eq.s32.totalorder %s899_s9, 3 }
   0xc   : > { %s1440_s11 = smov (%p40_p0, %s38_s11), 0  ;;  %s1442_s12 = smov (!%p40_p0, %s46_s12), %s1131_s30 }
   0xd   : > { %1421 = sst [smem:[#allocation14_spill]] %s1440_s11  ;;  %p1233_p3 = por %p237_p2, %p236_p1 }
   0xe   : > { %p242_p4 = scmp.ne.s32.totalorder %s1111_s25, %s1107_s24  ;;  %p48_p5 = scmp.ge.s32.totalorder %s1442_s12, 2 }
   0xf   : > { %p243_p6 = scmp.eq.s32.totalorder %s900_s10, 3  ;;  %p903_p7 = scmp.ge.s32.totalorder %s1135_s8, 1 }
  0x10   : > { %p306_p8 = scmp.lt.s32.totalorder %s1135_s8, 5  ;;  %s1444_s12 = smov (%p48_p5, %s1442_s12), 0 }
  0x11   : > { %1423 = sst [smem:[#allocation15_spill]] %s1444_s12  ;;  %p1243_p9 = por %p243_p6, %p242_p4 }
  0x12   : > { %p307_p10 = pnand %p903_p7, %p306_p8  ;;  %s221_s15 = ssub.s32 %s1131_s30, %s1444_s12 }
  0x13   : > { %s1424_s14 = scalar_select %p1243_p9, 1, 0 }
  0x14   : > { %s226_s16 = sadd.s32 1, %s1115_s26  ;;  %p224_p11 = scmp.eq.s32.totalorder %s221_s15, 0 }
  0x15   : > { %1425 = sst [smem:[#allocation16_spill]] %s1424_s14  ;;  %310 = sbr.rel (%p307_p10) target bundleno = 1732 (0x6c4), region = 48 }
  0x16   : > { %s1251_s17 = scalar_select %p224_p11, %s1115_s26, %s226_s16  }
  0x17   : > { %s1413_s18 = sand.u32 (!%p307_p10), 1, %s1111_s25   ;;  %p357_p12 = scmp.lt.s32.totalorder (!%p307_p10), %s1123_s28, 1 }
  0x18   : > { %1426 = sst [smem:[#allocation17_spill]] %s1251_s17  ;;  %s1267_s23 = sshll.u32 (!%p307_p10), %s1413_s18, 3 }
  0x19   : > { %s1427_s2 = sld [smem:[#allocation18_spill]] (!%p307_p10)  ;;  %p371_p13 = scmp.lt.s32.totalorder (!%p307_p10), %s1119_s27, 1 }
  0x1a   : > { %p383_p0 = scmp.eq.s32.totalorder %s1119_s27, 0  ;;  %s356_s14 = scalar_lea.vmem [#allocation8], %s1267_s23 }
  0x1b   : > { %s358_s9 = scalar_select %p357_p12, %s1123_s28, 1  ;;  %vm390_vm0 = vcmask (%p383_p0), 261120   ;;  %v1137_v4 = vmov (%p383_p0), 0.0   ;;  %v1138_v5 = vmov (%p383_p0), 32.0  }
  0x1c   : > { %s372_s10 = scalar_select %p371_p13, %s1119_s27, 1  ;;  %425 = vst.msk [vmem:[#allocation7] sm:$0xff] (%p383_p0), %vm390_vm0, %v1137_v4  ;;  %1013 = vrcp.f32 (%p383_p0), %v1138_v5 }
  0x1d   : > { %s905_s15 = sshll.u32 %s358_s9, 3  ;;  %388 = sbr.rel (!%p383_p0) target bundleno = 302 (0x12e), region = 52 }
  0x1e   : > { %s363_s19 = scalar_lea.vmem %s1403_s0, %s905_s15  ;;  %s1279_s30 = scalar_lea.vmem %s1404_s1, %s905_s15 }
  0x1f   : > { %v1258_v0 = vld [vmem:[%s1427_s2] sm:$0x1]  ;;  %v1263_v1 = vld [vmem:[%s1427_s2 + $0x1] sm:$0x1]  ;;  %s934_s21 = smul.u32 96, %s372_s10  ;;  %s931_s22 = sshll.u32 %s372_s10, 4 }
  0x20   : > { %s1284_s29 = scalar_lea.vmem %s1408_s5, %s931_s22  ;;  %v389_v2 = vld [vmem:[%s363_s19] sm:$0xff] (%p383_p0)  ;;  %v420_v26 = vperm.slane (%p383_p0), %v1258_v0, 0  ;;  %v422_v28 = vperm.slane (%p383_p0), %v1263_v1, 0 }
  0x21   : > { %s1289_s9 = scalar_lea.vmem %s1407_s4, %s934_s21  ;;  %v391_v3 = vsel (%p383_p0), %vm390_vm0, %v389_v2, 0.0 }
  0x22   : > { %392 = vadd.xlane.f32.xlu0 %v391_v3  ;;  %v1014_v6 = vpop.eup %1013 }
  0x23   : > { %v395_v7 = vmul.f32 32.0, %v1014_v6  ;;  %vm399_vm1 = vweird.f32 %v1014_v6 }
  0x25   : > { %v396_v8 = vsub.f32 1.0, %v395_v7 }
  0x27   : > { %v397_v9 = vmul.f32 %v1014_v6, %v396_v8 }
  0x29   : > { %v398_v10 = vadd.f32 %v1014_v6, %v397_v9 }
  0x2b   : > { %v400_v11 = vsel %vm399_vm1, %v1014_v6, %v398_v10 }
  0x95   : > { %v393_v12 = vpop.xlane.xlu0 %392 }
  0x96   : > { %v401_v13 = vmul.f32 %v400_v11, %v393_v12 }
  0x98   : > { %v402_v14 = vsub.f32 %v389_v2, %v401_v13 }
  0x9a   : > { %v403_v15 = vmul.f32 %v402_v14, %v402_v14 }
  0x9c   : > { %v404_v16 = vsel %vm390_vm0, %v403_v15, 0.0 }
  0x9d   : > { %405 = vadd.xlane.f32.xlu0 %v404_v16 }
 0x110   : > { %v406_v17 = vpop.xlane.xlu0 %405 }
 0x111   : > { %v407_v18 = vmul.f32 %v406_v17, %v400_v11 }
 0x113   : > { %v408_v19 = vadd.f32 1e-05, %v407_v18 }
 0x115   : > { %1015 = vrsqrt.f32 %v408_v19  ;;  %vm415_vm3 = vweird.f32 %v408_v19 }
 0x11b   : > { %v1016_v20 = vpop.eup %1015 }
 0x11c   : > { %v410_v21 = vmul.f32 %v1016_v20, %v408_v19  ;;  %vm416_vm2 = vweird.f32 %v1016_v20 }
 0x11d   : > { %vm417_vm4 = vmor %vm415_vm3, %vm416_vm2 }
 0x11e   : > { %v411_v22 = vmul.f32 %v1016_v20, %v410_v21 }
 0x120   : > { %v412_v23 = vmul.f32 0.5, %v411_v22 }
 0x122   : > { %v413_v24 = vsub.f32 1.5, %v412_v23 }
 0x124   : > { %v414_v25 = vmul.f32 %v1016_v20, %v413_v24 }
 0x126   : > { %v418_v27 = vsel %vm417_vm4, %v1016_v20, %v414_v25 }
 0x127   : > { %v419_v29 = vmul.f32 %v418_v27, %v402_v14 }
 0x129   : > { %v421_v30 = vmul.f32 %v420_v26, %v419_v29 }
 0x12b   : > { %v423_v31 = vadd.f32 %v422_v28, %v421_v30 }
 0x12d   : > { %424 = vst.msk [vmem:[#allocation2] sm:$0xff] %vm390_vm0, %v423_v31 }
 0x12e PF: > { %v433_v32 = vld [vmem:[%s1289_s9 + $0x18] sm:$0xff]  ;;  %vm434_vm5 = vcmask 261120   ;;  %v499_v33 = vld [vmem:[%s1279_s30] sm:$0xff]  ;;  %v432_v34 = vld [vmem:[%s1289_s9 + $0x10] sm:$0xff]  ;;  %v1139_v39 = vmov 32.0   ;;  %vm460_vm7 = vcmask 130048  }
 0x12f   : > { %450 = vmatpush.msra.mxu0 %v433_v32  ;;  %v501_v35 = vsel %vm434_vm5, %v499_v33, 0.0  ;;  %v431_v36 = vld [vmem:[%s1289_s9 + $0x8] sm:$0xff]  ;;  %v430_v37 = vld [vmem:[%s1289_s9] sm:$0xff]  ;;  %1024 = vrcp.f32 %v1139_v39  ;;  %v1140_v53 = vmov 16.0   ;;  %v915_v55 = vld [vmem:[%s1289_s9 + $0x38] sm:$0xff]  ;;  %v530_v20 = vperm.slane %v1258_v0, 0 }
 0x130   : > { %502 = vadd.xlane.f32.xlu0 %v501_v35  ;;  %1026 = vrcp.f32 %v1140_v53  ;;  %v920_v56 = vld [vmem:[%s1289_s9 + $0x58] sm:$0xff]  ;;  %554 = vmatpush.msra.mxu1 %v915_v55  ;;  %v914_v57 = vld [vmem:[%s1289_s9 + $0x30] sm:$0xff]  ;;  %v913_v59 = vld [vmem:[%s1289_s9 + $0x28] sm:$0xff]  ;;  %v532_v23 = vperm.slane %v1263_v1, 0  ;;  %vm495_vm2 = vcmask 7168   ;;  %vm651_vm3 = vcmask 64512  }
 0x131   : > { %451 = vmatpush.msra.mxu0 %v432_v34  ;;  %615 = vmatpush.msra.mxu2 %v920_v56  ;;  %v919_v58 = vld [vmem:[%s1289_s9 + $0x50] sm:$0xff]  ;;  %v918_v60 = vld [vmem:[%s1289_s9 + $0x48] sm:$0xff]  ;;  %v912_v62 = vld [vmem:[%s1289_s9 + $0x20] sm:$0xff]  ;;  %p751_p1 = scmp.eq.s32.totalorder %s1119_s27, 1 }
 0x132   : > { %555 = vmatpush.msra.mxu1 %v914_v57  ;;  %v917_v63 = vld [vmem:[%s1289_s9 + $0x40] sm:$0xff] }
 0x133   : > { %452 = vmatpush.msra.mxu0 %v431_v36  ;;  %616 = vmatpush.msra.mxu2 %v919_v58  ;;  %v1020_v1 = vld [vmem:[%s1406_s3] ss:$0 sm:$0xff]  ;;  %v1022_v55 = vld [vmem:[%s1406_s3 + $0x2] ss:$0 sm:$0xff]  ;;  %v1023_v58 = vld [vmem:[%s1406_s3 + $0x3] ss:$0 sm:$0xff] }
 0x134   : > { %v429_v38 = vld [vmem:[#allocation2] sm:$0xff]  ;;  %556 = vmatpush.msra.mxu1 %v913_v59 }
 0x135   : > { %453 = vmatpush.msra.mxu0 %v430_v37  ;;  %v1025_v40 = vpop.eup %1024  ;;  %617 = vmatpush.msra.mxu2 %v918_v60  ;;  %v1021_v37 = vld [vmem:[%s1406_s3 + $0x1] ss:$0 sm:$0xff] }
 0x136   : > { %911 = vmatmul.msk.f32.vlgmr.msra.gmra.mxu0 %vm434_vm5, %v429_v38  ;;  %v505_v41 = vmul.f32 32.0, %v1025_v40  ;;  %vm509_vm6 = vweird.f32 %v1025_v40  ;;  %v1027_v54 = vpop.eup %1026  ;;  %557 = vmatpush.msra.mxu1 %v912_v62 }
 0x137   : > { %v465_v61 = vmul.f32 16.0, %v1027_v54  ;;  %618 = vmatpush.msra.mxu2 %v917_v63  ;;  %vm469_vm8 = vweird.f32 %v1027_v54  ;;  %v1141_v63 = vmov -inf  }
 0x138   : > { %v506_v42 = vsub.f32 1.0, %v505_v41  ;;  %496 = vst.msk [vmem:[#allocation4] sm:$0xff] %vm495_vm2, %v1141_v63 }
 0x139   : > { %v466_v2 = vsub.f32 1.0, %v465_v61 }
 0x13a   : > { %v507_v43 = vmul.f32 %v1025_v40, %v506_v42 }
 0x13b   : > { %v467_v4 = vmul.f32 %v1027_v54, %v466_v2 }
 0x13c   : > { %v508_v44 = vadd.f32 %v1025_v40, %v507_v43 }
 0x13d   : > { %v468_v7 = vadd.f32 %v1027_v54, %v467_v4  ;;  %v1142_v4 = vmov 0  }
 0x13e   : > { %v510_v45 = vsel %vm509_vm6, %v1025_v40, %v508_v44  ;;  %1017 = vset.pattern.permute.xlu1 %v1142_v4  ;;  %1018 = vset.pattern.permute.xlu0 %v1142_v4 }
 0x13f   : > { %v470_v8 = vsel %vm469_vm8, %v1027_v54, %v468_v7  ;;  %1019 = vset.pattern.permute.xlu2 %v1142_v4 }
 0x1a3   : > { %v503_v46 = vpop.xlane.xlu0 %502 }
 0x1a4   : > { %v511_v47 = vmul.f32 %v510_v45, %v503_v46 }
 0x1a6   : > { %v512_v48 = vsub.f32 %v499_v33, %v511_v47 }
 0x1a8   : > { %v513_v49 = vmul.f32 %v512_v48, %v512_v48 }
 0x1aa   : > { %v514_v50 = vsel %vm434_vm5, %v513_v49, 0.0 }
 0x1ab   : > { %515 = vadd.xlane.f32.xlu0 %v514_v50 }
 0x1b3   : > { %v455_v51 = vpop.f32.mrf.mxu0 }
 0x1b4   : > { %v461_v52 = vsel %vm460_vm7, %v455_v51, 0.0 }
 0x1b5   : > { %462 = vadd.xlane.f32.xlu1 %v461_v52 }
 0x21e   : > { %v516_v3 = vpop.xlane.xlu0 %515 }
 0x21f   : > { %v517_v5 = vmul.f32 %v516_v3, %v510_v45 }
 0x221   : > { %v518_v6 = vadd.f32 1e-05, %v517_v5  ;;  %v1143_v5 = vmov 0.0  }
 0x222   : > { %498 = vst.msk [vmem:[#allocation6] sm:$0xff] %vm460_vm7, %v1143_v5 }
 0x223   : > { %1028 = vrsqrt.f32 %v518_v6  ;;  %vm525_vm10 = vweird.f32 %v518_v6  ;;  %497 = vst.msk [vmem:[#allocation5] sm:$0xff] %vm495_vm2, %v1143_v5 }
 0x228   : > { %v463_v9 = vpop.xlane.xlu1 %462 }
 0x229   : > { %v1029_v10 = vpop.eup %1028  ;;  %v471_v11 = vmul.f32 %v470_v8, %v463_v9 }
 0x22a   : > { %v520_v12 = vmul.f32 %v1029_v10, %v518_v6  ;;  %vm526_vm9 = vweird.f32 %v1029_v10  ;;  %v650_v6 = vld [vmem:[#allocation4] sm:$0xff] }
 0x22b   : > { %v472_v13 = vsub.f32 %v455_v51, %v471_v11  ;;  %vm527_vm11 = vmor %vm525_vm10, %vm526_vm9 }
 0x22c   : > { %v521_v14 = vmul.f32 %v1029_v10, %v520_v12 }
 0x22d   : > { %v473_v15 = vmul.f32 %v472_v13, %v472_v13 }
 0x22e   : > { %v522_v16 = vmul.f32 0.5, %v521_v14 }
 0x22f   : > { %v474_v17 = vsel %vm460_vm7, %v473_v15, 0.0 }
 0x230   : > { %v523_v18 = vsub.f32 1.5, %v522_v16  ;;  %475 = vadd.xlane.f32.xlu2 %v474_v17  ;;  %v725_v17 = vld [vmem:[%s1284_s29 + $0x8] sm:$0xff] }
 0x231   : > { %743 = vmatpush.msrb.mxu0 %v725_v17 }
 0x232   : > { %v524_v19 = vmul.f32 %v1029_v10, %v523_v18  ;;  %v724_v18 = vld [vmem:[%s1284_s29] sm:$0xff] }
 0x233   : > { %744 = vmatpush.msrb.mxu0 %v724_v18 }
 0x234   : > { %v528_v21 = vsel %vm527_vm11, %v1029_v10, %v524_v19  ;;  %v667_v19 = vld [vmem:[#allocation5] sm:$0xff] }
 0x235   : > { %v529_v22 = vmul.f32 %v528_v21, %v512_v48 }
 0x237   : > { %v531_v24 = vmul.f32 %v530_v20, %v529_v22 }
 0x239   : > { %v533_v25 = vadd.f32 %v532_v23, %v531_v24  ;;  %v675_v24 = vld [vmem:[#allocation6] sm:$0xff] }
 0x23b   : > { %916 = vmatmul.msk.f32.vlgmr.msra.gmra.mxu1 %vm434_vm5, %v533_v25  ;;  %921 = vmatmul.msk.f32.vlgmr.msra.gmra.mxu2 %vm434_vm5, %v533_v25 }
 0x2a3   : > { %v476_v26 = vpop.xlane.xlu2 %475 }
 0x2a4   : > { %v477_v27 = vmul.f32 %v476_v26, %v470_v8 }
 0x2a6   : > { %v478_v28 = vadd.f32 1e-05, %v477_v27 }
 0x2a8   : > { %1030 = vrsqrt.f32 %v478_v28  ;;  %vm485_vm12 = vweird.f32 %v478_v28 }
 0x2ae   : > { %v1031_v29 = vpop.eup %1030 }
 0x2af   : > { %v480_v30 = vmul.f32 %v1031_v29, %v478_v28  ;;  %vm486_vm13 = vweird.f32 %v1031_v29 }
 0x2b0   : > { %vm487_vm14 = vmor %vm485_vm12, %vm486_vm13 }
 0x2b1   : > { %v481_v31 = vmul.f32 %v1031_v29, %v480_v30 }
 0x2b3   : > { %v482_v32 = vmul.f32 0.5, %v481_v31 }
 0x2b5   : > { %v483_v0 = vsub.f32 1.5, %v482_v32 }
 0x2b7   : > { %v484_v33 = vmul.f32 %v1031_v29, %v483_v0 }
 0x2b8   : > { %v559_v34 = vpop.f32.mrf.mxu1 }
 0x2b9   : > { %v488_v35 = vsel %vm487_vm14, %v1031_v29, %v484_v33  ;;  %v565_v36 = vsel %vm460_vm7, %v559_v34, 0.0 }
 0x2ba   : > { %v489_v38 = vmul.f32 %v488_v35, %v472_v13  ;;  %566 = vadd.xlane.f32.xlu1 %v565_v36 }
 0x2bc   : > { %v491_v39 = vmul.f32 %v1020_v1, %v489_v38  ;;  %v1040_v38 = vld [vmem:[%s1409_s6] ss:$0 sm:$0xff] (%p751_p1) }
 0x2be   : > { %v493_v40 = vadd.f32 %v1021_v37, %v491_v39  ;;  %v620_v61 = vpop.f32.mrf.mxu2 }
 0x2c0   : > { %494 = vst.msk [vmem:[#allocation3] sm:$0xff] %vm460_vm7, %v493_v40 }
 0x2c7   : > { %v623_v62 = vld [vmem:[#allocation3] sm:$0xff] }
 0x32d   : > { %v567_v41 = vpop.xlane.xlu1 %566 }
 0x32e   : > { %v575_v42 = vmul.f32 %v567_v41, %v470_v8 }
 0x330   : > { %v576_v43 = vsub.f32 %v559_v34, %v575_v42  ;;  %v723_v34 = vld [vmem:[#allocation7] sm:$0xff] }
 0x332   : > { %v577_v44 = vmul.f32 %v576_v43, %v576_v43 }
 0x334   : > { %v578_v45 = vsel %vm460_vm7, %v577_v44, 0.0 }
 0x335   : > { %579 = vadd.xlane.f32.xlu2 %v578_v45 }
 0x3a8   : > { %v580_v46 = vpop.xlane.xlu2 %579 }
 0x3a9   : > { %v581_v47 = vmul.f32 %v580_v46, %v470_v8 }
 0x3ab   : > { %v582_v48 = vadd.f32 1e-05, %v581_v47 }
 0x3ad   : > { %1032 = vrsqrt.f32 %v582_v48  ;;  %vm589_vm0 = vweird.f32 %v582_v48 }
 0x3b3   : > { %v1033_v49 = vpop.eup %1032 }
 0x3b4   : > { %v584_v50 = vmul.f32 %v1033_v49, %v582_v48  ;;  %vm590_vm15 = vweird.f32 %v1033_v49 }
 0x3b5   : > { %vm591_vm1 = vmor %vm589_vm0, %vm590_vm15 }
 0x3b6   : > { %v585_v51 = vmul.f32 %v1033_v49, %v584_v50 }
 0x3b8   : > { %v586_v52 = vmul.f32 0.5, %v585_v51 }
 0x3ba   : > { %v587_v53 = vsub.f32 1.5, %v586_v52 }
 0x3bc   : > { %v588_v54 = vmul.f32 %v1033_v49, %v587_v53 }
 0x3be   : > { %v592_v56 = vsel %vm591_vm1, %v1033_v49, %v588_v54 }
 0x3bf   : > { %v593_v57 = vmul.f32 %v592_v56, %v576_v43 }
 0x3c1   : > { %v595_v59 = vmul.f32 %v1022_v55, %v593_v57 }
 0x3c3   : > { %v597_v60 = vadd.f32 %v1023_v58, %v595_v59 }
 0x3c5   : > { %922 = vmatpush.xpose.msk.msra.mxu3 %vm460_vm7, %v597_v60 }
 0x3c8   : > { %923 = vmatmul.msk.f32.vlgmr.msra.gmra.mxu3 %vm460_vm7, %v623_v62 }
 0x3c9   : > { %700 = vmatpush.msrb.mxu3 %v620_v61 }
 0x44b   : > { %v647_v2 = vpop.f32.mrf.mxu3 }
 0x44c   : > { %v652_v3 = vsel %vm651_vm3, %v647_v2, -inf }
 0x44d   : > { %653 = vmax.xlane.f32.xlu0 %v652_v3 }
 0x4c0   : > { %v654_v7 = vpop.xlane.xlu0 %653 }
 0x4c1   : > { %v655_v8 = vmax.f32 %v650_v6, %v654_v7 }
 0x4c3   : > { %v656_v9 = vsub.f32 %v650_v6, %v655_v8  ;;  %707 = vst.msk [vmem:[#allocation4] sm:$0xff] %vm495_vm2, %v655_v8  ;;  %661 = vperm.xlu1 %1017, %v655_v8  }
 0x4c5   : > { %v657_v10 = vmul.f32 1.442695, %v656_v9 }
 0x4c7   : > { %1034 = vpow2.f32 %v657_v10 }
 0x4cd   : > { %v1035_v11 = vpop.eup %1034 }
 0x4ce   : > { %678 = vperm.xlu0 %1018, %v1035_v11   ;;  %v668_v20 = vmul.f32 %v1035_v11, %v667_v19 }
 0x535   : > { %v662_v12 = vpop.permute.xlu1 %661 }
 0x536   : > { %v664_v13 = vsub.f32 %v647_v2, %v662_v12 }
 0x538   : > { %v665_v14 = vmul.f32 1.442695, %v664_v13 }
 0x53a   : > { %1036 = vpow2.f32 %v665_v14 }
 0x540   : > { %v1037_v15 = vpop.eup %1036  ;;  %v679_v25 = vpop.permute.xlu0 %678 }
 0x541   : > { %924 = vmatmul.msk.f32.vlgmr.msrb.gmra.mxu3 %vm651_vm3, %v1037_v15  ;;  %v669_v16 = vsel %vm651_vm3, %v1037_v15, 0.0  ;;  %v681_v26 = vmul.f32 %v679_v25, %v675_v24 }
 0x542   : > { %670 = vadd.xlane.f32.xlu2 %v669_v16 }
 0x5b5   : > { %v671_v21 = vpop.xlane.xlu2 %670 }
 0x5b6   : > { %v672_v22 = vadd.f32 %v671_v21, %v668_v20 }
 0x5b8   : > { %674 = vst.msk [vmem:[#allocation5] sm:$0xff] %vm495_vm2, %v672_v22 }
 0x5bf   : > { %v711_v23 = vld [vmem:[#allocation5] sm:$0xff] }
 0x5c0   : > { %1038 = vrcp.f32 %v711_v23 }
 0x5c4   : > { %v702_v27 = vpop.f32.mrf.mxu3 }
 0x5c5   : > { %v705_v28 = vadd.f32 %v702_v27, %v681_v26 }
 0x5c6   : > { %v1039_v29 = vpop.eup %1038 }
 0x5c7   : > { %706 = vst.msk [vmem:[#allocation6] sm:$0xff] %vm460_vm7, %v705_v28  ;;  %v713_v30 = vmul.f32 %v1039_v29, %v711_v23 }
 0x5c9   : > { %v714_v31 = vsub.f32 2.0, %v713_v30 }
 0x5cb   : > { %v715_v32 = vmul.f32 %v1039_v29, %v714_v31 }
 0x5cd   : > { %719 = vperm.xlu2 %1019, %v715_v32  }
 0x5ce   : > { %v716_v0 = vld [vmem:[#allocation6] sm:$0xff] }
 0x627   : > { %v720_v33 = vpop.permute.xlu2 %719 }
 0x628   : > { %v722_v1 = vmul.f32 %v720_v33, %v716_v0 }
 0x62a   : > { %925 = vmatmul.msk.f32.vlgmr.msrb.gmra.mxu0 %vm460_vm7, %v722_v1 }
 0x6a6   : > { %755 = sbr.rel (!%p751_p1) target bundleno = 1717 (0x6b5), region = 64 }
 0x6a7   : > { %v746_v35 = vpop.f32.mrf.mxu0 }
 0x6a8   : > { %v749_v36 = vadd.f32 %v746_v35, %v723_v34 }
 0x6aa   : > { %750 = vst.msk [vmem:[#allocation7] sm:$0xff] %vm434_vm5, %v749_v36 }
 0x6b1   : > { %v756_v37 = vld [vmem:[#allocation7] sm:$0xff] }
 0x6b2   : > { %v761_v39 = vadd.f32 %v1040_v38, %v756_v37 }
 0x6b4   : > { %762 = vst.msk [vmem:[%s356_s14] sm:$0xff] %vm434_vm5, %v761_v39 }
 0x6b5 PF: > { %s928_s27 = sshll.u32 %s1123_s28, 3  ;;  %s777_s21 = sshll.u32 %s356_s14, 4  ;;  %s778_s21 = int_to_ptr.vmem [resolvable:$true] %s777_s21 }
 0x6b6   : > { %s775_s20 = scalar_lea.hbm %s1410_s7, %s928_s27  ;;  %s1428_s9 = sand.u32 1, %s1111_s25  }
 0x6b7   : > { %s779_s22 = sshll.u32 %s775_s20, 4  ;;  %s764_s2 = scalar_lea.sflag [#allocation9], %s1428_s9  ;;  %s780_s22 = int_to_ptr.hbm [resolvable:$true] %s779_s22 }
 0x6b8   : > { %s1055_s26 = sshra.s32 %s780_s22, 4  ;;  %s1061_s12 = scalar_lea.hbm %s1410_s7, 16  ;;  %s1056_s26 = int_to_ptr.hbm [resolvable:$true] %s1055_s26 }
 0x6b9   : > { %s1057_s30 = scalar_lea.hbm %s1056_s26, 8  ;;  %p1062_p6 = scmp.lt.s32.totalorder %s1056_s26, %s1410_s7 }
 0x6ba   : > { %p1058_p2 = scmp.ne.s32.totalorder %s1056_s26, %s1057_s30  ;;  %p1063_p7 = scmp.lt.s32.totalorder %s1061_s12, %s1057_s30 }
 0x6bc   : > { %p1059_p4 = pnand %p1058_p2, %p1233_p3  ;;  %p1064_p8 = por %p1063_p7, %p1062_p6 }
 0x6be   : > { %p1060_p5 = pneg %p1059_p4 }
 0x6c0   : > { %p1065_p10 = pnand %p1064_p8, %p1060_p5 }
 0x6c2   : > { %1068 = shalt.err (!%p1065_p10)
}
 0x6c3   : > { %935 = dma.vmem_to_hbm [thread:$0]  (%p1233_p3), %s778_s21, 128, %s780_s22, %s764_s2  }
 0x6c4 PF: > { %p941_p11 = scmp.ge.s32.totalorder %s1135_s8, 2  ;;  %s791_s23 = sand.u32 1, %s1107_s24  }
 0x6c5   : > { %s792_s10 = scalar_lea.sflag [#allocation9], %s791_s23 }
 0x6c6   : > { %p938_p12 = pnand %p941_p11, %p1243_p9 }
 0x6c8   : > { %p939_p13 = pneg %p938_p12 }
 0x6ca   : > { %1102 = dma.done.wait (%p939_p13), %s792_s10, 128  }
 0x6cb   : > { %1104 = vsyncadd (%p939_p13), %s792_s10, 4294967168  ;;  %s20_s8 = sadd.s32 1, %s1135_s8   ;;  %s1430_s29 = sld [smem:[#allocation11_spill]] }
 0x6cc   : > { %p17_p0 = scmp.ge.s32.totalorder %s20_s8, 6   ;;  %s1431_s26 = sld [smem:[#allocation17_spill]] }
 0x6cd   : > { %s1432_s27 = sld [smem:[#allocation12_spill]]  ;;  %s1436_s24 = smov %s1111_s25 }
 0x6ce   : > { %s1433_s28 = sld [smem:[#allocation13_spill]] }
 0x6cf   : > { %s1434_s13 = sld [smem:[#allocation14_spill]] }
 0x6d0   : > { %s1435_s30 = sld [smem:[#allocation15_spill]] }
 0x6d1   : > { %s1437_s25 = smov %s1430_s29  ;;  %19 = sbr.rel (!%p17_p0) target bundleno = 7 (0x7), region = 110 }
 0x6d5   : > { %s1438_s29 = smov %s1434_s13 }
 0x6d6   :  { %798 = vsyncpa [#allocation9], 1 }
 0x6d7   :  { %800 = vsyncpa [#allocation9 + $0x1], 1 }

</bundles_post_ra>
